<compile_context>
chip_gen: v7x
topology: tpu7x:2x2x1
jax: 0.10.0
libtpu: 0.0.40
codegen_flags: <defaults>
</compile_context>

<pallas_src>
import functools

import jax
import jax.numpy as jnp
from jax.experimental import pallas as pl
from jax.experimental.pallas import tpu as pltpu


def _sigmoid_eup(v):
    # sigmoid(x) == 0.5 * tanh(x/2) + 0.5 ; tanh runs on the EUP slot.
    return 0.5 * jnp.tanh(0.5 * v) + 0.5


def convt_sigmoid_kernel(w_ref, b_ref, x_ref, o_ref, *, groups):
    # w_ref: SMEM (C_in*opg,) f32   flat weights, index (g*ipg+ic)*opg+oc
    # b_ref: SMEM (C_out,)    f32   flat bias,    index g*opg+oc
    # x_ref: VMEM (N, C_in, H, W)   full input
    # o_ref: VMEM (N, C_out, Hp, Wp) full output
    N, C_in, H, W = x_ref.shape
    _, C_out, Hp, Wp = o_ref.shape
    ipg = C_in // groups
    opg = C_out // groups

    # Hoist the 1-pixel-border-cropped channel slices: each input channel is
    # loaded once (offset-1 lane slice) and reused for every output channel.
    xc = [x_ref[:, c, pl.ds(1, Hp), pl.ds(1, Wp)].astype(jnp.float32)
          for c in range(C_in)]                      # each (N, Hp, Wp)

    for g in range(groups):                          # static unroll (2)
        for oc in range(opg):                        # static unroll (2)
            acc = jnp.zeros((N, Hp, Wp), jnp.float32)
            for ic in range(ipg):                    # static unroll (2)
                w = w_ref[(g * ipg + ic) * opg + oc]   # SMEM scalar
                acc = acc + xc[g * ipg + ic] * w       # VPU FMA
            acc = acc + b_ref[g * opg + oc]
            acc = _sigmoid_eup(acc)                  # sigmoid #1
            acc = _sigmoid_eup(acc)                  # sigmoid #2
            acc = _sigmoid_eup(acc)                  # sigmoid #3
            o_ref[:, g * opg + oc, :, :] = acc.astype(o_ref.dtype)


def model_forward(x, weight, bias, groups):
    """x: (N, C_in, H, W) NCHW; weight: (C_in, C_out/groups, 1, 1); bias: (C_out,)."""
    N, C_in, H, W = x.shape
    opg = weight.shape[1]
    C_out = opg * groups
    Hp, Wp = H - 2, W - 2

    # Flat scalar parameters for SMEM: index (g*ipg + ic)*opg + oc.
    w_flat = weight[:, :, 0, 0].reshape(-1).astype(jnp.float32)   # (C_in*opg,)
    b_flat = bias.astype(jnp.float32)                             # (C_out,)

    kernel = functools.partial(convt_sigmoid_kernel, groups=groups)

    out = pl.pallas_call(
        kernel,
        out_shape=jax.ShapeDtypeStruct((N, C_out, Hp, Wp), x.dtype),
        grid=(1,),                                   # single invocation
        in_specs=[
            pl.BlockSpec(memory_space=pltpu.MemorySpace.SMEM),   # weights (scalars)
            pl.BlockSpec(memory_space=pltpu.MemorySpace.SMEM),   # bias (scalars)
            pl.BlockSpec((N, C_in, H, W), lambda i: (0, 0, 0, 0)),
        ],
        out_specs=pl.BlockSpec((N, C_out, Hp, Wp), lambda i: (0, 0, 0, 0)),
        compiler_params=pltpu.CompilerParams(
            dimension_semantics=("arbitrary",)),
    )(w_flat, b_flat, x)
    return out
    # TODO(synk): for large spatial dims, add an H-row tile axis (512-1024 rows
    # per block) and a lane-dense (multiple-of-128) output contract; at 16x16
    # the single full-array block is optimal.


def reference_forward(x, weight, bias, groups):
    """Pure-JAX reference of the same semantics (for validation)."""
    N, C_in, H, W = x.shape
    opg = weight.shape[1]
    ipg = C_in // groups
    xc = x[:, :, 1:H - 1, 1:W - 1]
    outs = []
    for g in range(groups):
        xg = xc[:, g * ipg:(g + 1) * ipg]                       # (N, ipg, H', W')
        wg = weight[g * ipg:(g + 1) * ipg, :, 0, 0]             # (ipg, opg)
        yg = jnp.einsum('nchw,co->nohw', xg, wg)
        yg = yg + bias[g * opg:(g + 1) * opg][None, :, None, None]
        outs.append(yg)
    y = jnp.concatenate(outs, axis=1)
    y = jax.nn.sigmoid(y)
    y = jax.nn.sigmoid(y)
    y = jax.nn.sigmoid(y)
    return y


if __name__ == "__main__":
    key = jax.random.PRNGKey(0)
    N, C_in, H, W = 2, 4, 16, 16
    groups = 2
    C_out = 4

    k_x, k_w, k_b = jax.random.split(key, 3)
    x = jax.random.normal(k_x, (N, C_in, H, W), dtype=jnp.float32)

    # Deterministic parameter init (PyTorch-style uniform bound 1/sqrt(fan)).
    fan = (C_out // groups) * 1 * 1
    bound = 1.0 / (fan ** 0.5)
    weight = jax.random.uniform(k_w, (C_in, C_out // groups, 1, 1),
                                minval=-bound, maxval=bound, dtype=jnp.float32)
    bias = jax.random.uniform(k_b, (C_out,),
                              minval=-bound, maxval=bound, dtype=jnp.float32)

    out = model_forward(x, weight, bias, groups)
    out = jax.block_until_ready(out)

    ref = reference_forward(x, weight, bias, groups)
    assert out.shape == (N, C_out, H - 2, W - 2), out.shape
    assert jnp.allclose(out, ref, atol=1e-5, rtol=1e-5), "mismatch vs reference"

    print("KERNEL_OK")
</pallas_src>

<mosaic_0001>
module attributes {stable_mosaic.version = 11 : i64} {
  func.func @convt_sigmoid_kernel(%arg0: i32, %arg1: memref<8xf32, #tpu.memory_space<smem>>, %arg2: memref<4xf32, #tpu.memory_space<smem>>, %arg3: memref<2x4x16x16xf32, #tpu.memory_space<vmem>>, %arg4: memref<2x4x14x14xf32, #tpu.memory_space<vmem>>) attributes {dimension_semantics = [#tpu.dimension_semantics<arbitrary>], iteration_bounds = array<i64: 1>, scalar_prefetch = 0 : i64, scratch_operands = 0 : i64, tpu.core_type = #tpu.core_type<tc>, window_params = [{transform_indices = @transform_0, window_bounds = array<i64: 8>}, {transform_indices = @transform_1, window_bounds = array<i64: 4>}, {pipeline_mode = #tpu.pipeline_mode<synchronous>, transform_indices = @transform_2, window_bounds = array<i64: 2, 4, 16, 16>}, {pipeline_mode = #tpu.pipeline_mode<synchronous>, transform_indices = @transform_3, window_bounds = array<i64: 2, 4, 14, 14>}]} {
    %c0 = arith.constant 0 : index
    %c0_0 = arith.constant 0 : index
    %c1 = arith.constant 1 : index
    %c1_1 = arith.constant 1 : index
    %0 = vector.load %arg3[%c0, %c0_0, %c1, %c1_1] : memref<2x4x16x16xf32, #tpu.memory_space<vmem>>, vector<2x1x14x14xf32>
    %1 = vector.shape_cast %0 : vector<2x1x14x14xf32> to vector<2x14x14xf32>
    %c0_2 = arith.constant 0 : index
    %c1_3 = arith.constant 1 : index
    %c1_4 = arith.constant 1 : index
    %c1_5 = arith.constant 1 : index
    %2 = vector.load %arg3[%c0_2, %c1_3, %c1_4, %c1_5] : memref<2x4x16x16xf32, #tpu.memory_space<vmem>>, vector<2x1x14x14xf32>
    %3 = vector.shape_cast %2 : vector<2x1x14x14xf32> to vector<2x14x14xf32>
    %c0_6 = arith.constant 0 : index
    %c2 = arith.constant 2 : index
    %c1_7 = arith.constant 1 : index
    %c1_8 = arith.constant 1 : index
    %4 = vector.load %arg3[%c0_6, %c2, %c1_7, %c1_8] : memref<2x4x16x16xf32, #tpu.memory_space<vmem>>, vector<2x1x14x14xf32>
    %5 = vector.shape_cast %4 : vector<2x1x14x14xf32> to vector<2x14x14xf32>
    %c0_9 = arith.constant 0 : index
    %c3 = arith.constant 3 : index
    %c1_10 = arith.constant 1 : index
    %c1_11 = arith.constant 1 : index
    %6 = vector.load %arg3[%c0_9, %c3, %c1_10, %c1_11] : memref<2x4x16x16xf32, #tpu.memory_space<vmem>>, vector<2x1x14x14xf32>
    %7 = vector.shape_cast %6 : vector<2x1x14x14xf32> to vector<2x14x14xf32>
    %cst = arith.constant 0.000000e+00 : f32
    %8 = vector.broadcast %cst : f32 to vector<2x14x14xf32>
    %c0_12 = arith.constant 0 : index
    %9 = memref.load %arg1[%c0_12] : memref<8xf32, #tpu.memory_space<smem>>
    %10 = vector.broadcast %9 : f32 to vector<2x14x14xf32>
    %11 = arith.mulf %1, %10 : vector<2x14x14xf32>
    %12 = arith.addf %8, %11 : vector<2x14x14xf32>
    %c2_13 = arith.constant 2 : index
    %13 = memref.load %arg1[%c2_13] : memref<8xf32, #tpu.memory_space<smem>>
    %14 = vector.broadcast %13 : f32 to vector<2x14x14xf32>
    %15 = arith.mulf %3, %14 : vector<2x14x14xf32>
    %16 = arith.addf %12, %15 : vector<2x14x14xf32>
    %c0_14 = arith.constant 0 : index
    %17 = memref.load %arg2[%c0_14] : memref<4xf32, #tpu.memory_space<smem>>
    %18 = vector.broadcast %17 : f32 to vector<2x14x14xf32>
    %19 = arith.addf %16, %18 : vector<2x14x14xf32>
    %cst_15 = arith.constant 5.000000e-01 : f32
    %20 = vector.broadcast %cst_15 : f32 to vector<2x14x14xf32>
    %21 = arith.mulf %20, %19 : vector<2x14x14xf32>
    %22 = math.tanh %21 : vector<2x14x14xf32>
    %cst_16 = arith.constant 5.000000e-01 : f32
    %23 = vector.broadcast %cst_16 : f32 to vector<2x14x14xf32>
    %24 = arith.mulf %23, %22 : vector<2x14x14xf32>
    %cst_17 = arith.constant 5.000000e-01 : f32
    %25 = vector.broadcast %cst_17 : f32 to vector<2x14x14xf32>
    %26 = arith.addf %24, %25 : vector<2x14x14xf32>
    %cst_18 = arith.constant 5.000000e-01 : f32
    %27 = vector.broadcast %cst_18 : f32 to vector<2x14x14xf32>
    %28 = arith.mulf %27, %26 : vector<2x14x14xf32>
    %29 = math.tanh %28 : vector<2x14x14xf32>
    %cst_19 = arith.constant 5.000000e-01 : f32
    %30 = vector.broadcast %cst_19 : f32 to vector<2x14x14xf32>
    %31 = arith.mulf %30, %29 : vector<2x14x14xf32>
    %cst_20 = arith.constant 5.000000e-01 : f32
    %32 = vector.broadcast %cst_20 : f32 to vector<2x14x14xf32>
    %33 = arith.addf %31, %32 : vector<2x14x14xf32>
    %cst_21 = arith.constant 5.000000e-01 : f32
    %34 = vector.broadcast %cst_21 : f32 to vector<2x14x14xf32>
    %35 = arith.mulf %34, %33 : vector<2x14x14xf32>
    %36 = math.tanh %35 : vector<2x14x14xf32>
    %cst_22 = arith.constant 5.000000e-01 : f32
    %37 = vector.broadcast %cst_22 : f32 to vector<2x14x14xf32>
    %38 = arith.mulf %37, %36 : vector<2x14x14xf32>
    %cst_23 = arith.constant 5.000000e-01 : f32
    %39 = vector.broadcast %cst_23 : f32 to vector<2x14x14xf32>
    %40 = arith.addf %38, %39 : vector<2x14x14xf32>
    %c0_24 = arith.constant 0 : index
    %c0_25 = arith.constant 0 : index
    %c0_26 = arith.constant 0 : index
    %c0_27 = arith.constant 0 : index
    %41 = vector.load %arg4[%c0_24, %c0_25, %c0_26, %c0_27] : memref<2x4x14x14xf32, #tpu.memory_space<vmem>>, vector<2x1x14x14xf32>
    %42 = vector.shape_cast %41 : vector<2x1x14x14xf32> to vector<2x14x14xf32>
    %43 = vector.shape_cast %40 : vector<2x14x14xf32> to vector<2x1x14x14xf32>
    tpu.vector_store %arg4[%c0_24, %c0_25, %c0_26, %c0_27], %43 {strides = array<i32>} : memref<2x4x14x14xf32, #tpu.memory_space<vmem>>, vector<2x1x14x14xf32>,
    %cst_28 = arith.constant 0.000000e+00 : f32
    %44 = vector.broadcast %cst_28 : f32 to vector<2x14x14xf32>
    %c1_29 = arith.constant 1 : index
    %45 = memref.load %arg1[%c1_29] : memref<8xf32, #tpu.memory_space<smem>>
    %46 = vector.broadcast %45 : f32 to vector<2x14x14xf32>
    %47 = arith.mulf %1, %46 : vector<2x14x14xf32>
    %48 = arith.addf %44, %47 : vector<2x14x14xf32>
    %c3_30 = arith.constant 3 : index
    %49 = memref.load %arg1[%c3_30] : memref<8xf32, #tpu.memory_space<smem>>
    %50 = vector.broadcast %49 : f32 to vector<2x14x14xf32>
    %51 = arith.mulf %3, %50 : vector<2x14x14xf32>
    %52 = arith.addf %48, %51 : vector<2x14x14xf32>
    %c1_31 = arith.constant 1 : index
    %53 = memref.load %arg2[%c1_31] : memref<4xf32, #tpu.memory_space<smem>>
    %54 = vector.broadcast %53 : f32 to vector<2x14x14xf32>
    %55 = arith.addf %52, %54 : vector<2x14x14xf32>
    %cst_32 = arith.constant 5.000000e-01 : f32
    %56 = vector.broadcast %cst_32 : f32 to vector<2x14x14xf32>
    %57 = arith.mulf %56, %55 : vector<2x14x14xf32>
    %58 = math.tanh %57 : vector<2x14x14xf32>
    %cst_33 = arith.constant 5.000000e-01 : f32
    %59 = vector.broadcast %cst_33 : f32 to vector<2x14x14xf32>
    %60 = arith.mulf %59, %58 : vector<2x14x14xf32>
    %cst_34 = arith.constant 5.000000e-01 : f32
    %61 = vector.broadcast %cst_34 : f32 to vector<2x14x14xf32>
    %62 = arith.addf %60, %61 : vector<2x14x14xf32>
    %cst_35 = arith.constant 5.000000e-01 : f32
    %63 = vector.broadcast %cst_35 : f32 to vector<2x14x14xf32>
    %64 = arith.mulf %63, %62 : vector<2x14x14xf32>
    %65 = math.tanh %64 : vector<2x14x14xf32>
    %cst_36 = arith.constant 5.000000e-01 : f32
    %66 = vector.broadcast %cst_36 : f32 to vector<2x14x14xf32>
    %67 = arith.mulf %66, %65 : vector<2x14x14xf32>
    %cst_37 = arith.constant 5.000000e-01 : f32
    %68 = vector.broadcast %cst_37 : f32 to vector<2x14x14xf32>
    %69 = arith.addf %67, %68 : vector<2x14x14xf32>
    %cst_38 = arith.constant 5.000000e-01 : f32
    %70 = vector.broadcast %cst_38 : f32 to vector<2x14x14xf32>
    %71 = arith.mulf %70, %69 : vector<2x14x14xf32>
    %72 = math.tanh %71 : vector<2x14x14xf32>
    %cst_39 = arith.constant 5.000000e-01 : f32
    %73 = vector.broadcast %cst_39 : f32 to vector<2x14x14xf32>
    %74 = arith.mulf %73, %72 : vector<2x14x14xf32>
    %cst_40 = arith.constant 5.000000e-01 : f32
    %75 = vector.broadcast %cst_40 : f32 to vector<2x14x14xf32>
    %76 = arith.addf %74, %75 : vector<2x14x14xf32>
    %c0_41 = arith.constant 0 : index
    %c1_42 = arith.constant 1 : index
    %c0_43 = arith.constant 0 : index
    %c0_44 = arith.constant 0 : index
    %77 = vector.load %arg4[%c0_41, %c1_42, %c0_43, %c0_44] : memref<2x4x14x14xf32, #tpu.memory_space<vmem>>, vector<2x1x14x14xf32>
    %78 = vector.shape_cast %77 : vector<2x1x14x14xf32> to vector<2x14x14xf32>
    %79 = vector.shape_cast %76 : vector<2x14x14xf32> to vector<2x1x14x14xf32>
    tpu.vector_store %arg4[%c0_41, %c1_42, %c0_43, %c0_44], %79 {strides = array<i32>} : memref<2x4x14x14xf32, #tpu.memory_space<vmem>>, vector<2x1x14x14xf32>,
    %cst_45 = arith.constant 0.000000e+00 : f32
    %80 = vector.broadcast %cst_45 : f32 to vector<2x14x14xf32>
    %c4 = arith.constant 4 : index
    %81 = memref.load %arg1[%c4] : memref<8xf32, #tpu.memory_space<smem>>
    %82 = vector.broadcast %81 : f32 to vector<2x14x14xf32>
    %83 = arith.mulf %5, %82 : vector<2x14x14xf32>
    %84 = arith.addf %80, %83 : vector<2x14x14xf32>
    %c6 = arith.constant 6 : index
    %85 = memref.load %arg1[%c6] : memref<8xf32, #tpu.memory_space<smem>>
    %86 = vector.broadcast %85 : f32 to vector<2x14x14xf32>
    %87 = arith.mulf %7, %86 : vector<2x14x14xf32>
    %88 = arith.addf %84, %87 : vector<2x14x14xf32>
    %c2_46 = arith.constant 2 : index
    %89 = memref.load %arg2[%c2_46] : memref<4xf32, #tpu.memory_space<smem>>
    %90 = vector.broadcast %89 : f32 to vector<2x14x14xf32>
    %91 = arith.addf %88, %90 : vector<2x14x14xf32>
    %cst_47 = arith.constant 5.000000e-01 : f32
    %92 = vector.broadcast %cst_47 : f32 to vector<2x14x14xf32>
    %93 = arith.mulf %92, %91 : vector<2x14x14xf32>
    %94 = math.tanh %93 : vector<2x14x14xf32>
    %cst_48 = arith.constant 5.000000e-01 : f32
    %95 = vector.broadcast %cst_48 : f32 to vector<2x14x14xf32>
    %96 = arith.mulf %95, %94 : vector<2x14x14xf32>
    %cst_49 = arith.constant 5.000000e-01 : f32
    %97 = vector.broadcast %cst_49 : f32 to vector<2x14x14xf32>
    %98 = arith.addf %96, %97 : vector<2x14x14xf32>
    %cst_50 = arith.constant 5.000000e-01 : f32
    %99 = vector.broadcast %cst_50 : f32 to vector<2x14x14xf32>
    %100 = arith.mulf %99, %98 : vector<2x14x14xf32>
    %101 = math.tanh %100 : vector<2x14x14xf32>
    %cst_51 = arith.constant 5.000000e-01 : f32
    %102 = vector.broadcast %cst_51 : f32 to vector<2x14x14xf32>
    %103 = arith.mulf %102, %101 : vector<2x14x14xf32>
    %cst_52 = arith.constant 5.000000e-01 : f32
    %104 = vector.broadcast %cst_52 : f32 to vector<2x14x14xf32>
    %105 = arith.addf %103, %104 : vector<2x14x14xf32>
    %cst_53 = arith.constant 5.000000e-01 : f32
    %106 = vector.broadcast %cst_53 : f32 to vector<2x14x14xf32>
    %107 = arith.mulf %106, %105 : vector<2x14x14xf32>
    %108 = math.tanh %107 : vector<2x14x14xf32>
    %cst_54 = arith.constant 5.000000e-01 : f32
    %109 = vector.broadcast %cst_54 : f32 to vector<2x14x14xf32>
    %110 = arith.mulf %109, %108 : vector<2x14x14xf32>
    %cst_55 = arith.constant 5.000000e-01 : f32
    %111 = vector.broadcast %cst_55 : f32 to vector<2x14x14xf32>
    %112 = arith.addf %110, %111 : vector<2x14x14xf32>
    %c0_56 = arith.constant 0 : index
    %c2_57 = arith.constant 2 : index
    %c0_58 = arith.constant 0 : index
    %c0_59 = arith.constant 0 : index
    %113 = vector.load %arg4[%c0_56, %c2_57, %c0_58, %c0_59] : memref<2x4x14x14xf32, #tpu.memory_space<vmem>>, vector<2x1x14x14xf32>
    %114 = vector.shape_cast %113 : vector<2x1x14x14xf32> to vector<2x14x14xf32>
    %115 = vector.shape_cast %112 : vector<2x14x14xf32> to vector<2x1x14x14xf32>
    tpu.vector_store %arg4[%c0_56, %c2_57, %c0_58, %c0_59], %115 {strides = array<i32>} : memref<2x4x14x14xf32, #tpu.memory_space<vmem>>, vector<2x1x14x14xf32>,
    %cst_60 = arith.constant 0.000000e+00 : f32
    %116 = vector.broadcast %cst_60 : f32 to vector<2x14x14xf32>
    %c5 = arith.constant 5 : index
    %117 = memref.load %arg1[%c5] : memref<8xf32, #tpu.memory_space<smem>>
    %118 = vector.broadcast %117 : f32 to vector<2x14x14xf32>
    %119 = arith.mulf %5, %118 : vector<2x14x14xf32>
    %120 = arith.addf %116, %119 : vector<2x14x14xf32>
    %c7 = arith.constant 7 : index
    %121 = memref.load %arg1[%c7] : memref<8xf32, #tpu.memory_space<smem>>
    %122 = vector.broadcast %121 : f32 to vector<2x14x14xf32>
    %123 = arith.mulf %7, %122 : vector<2x14x14xf32>
    %124 = arith.addf %120, %123 : vector<2x14x14xf32>
    %c3_61 = arith.constant 3 : index
    %125 = memref.load %arg2[%c3_61] : memref<4xf32, #tpu.memory_space<smem>>
    %126 = vector.broadcast %125 : f32 to vector<2x14x14xf32>
    %127 = arith.addf %124, %126 : vector<2x14x14xf32>
    %cst_62 = arith.constant 5.000000e-01 : f32
    %128 = vector.broadcast %cst_62 : f32 to vector<2x14x14xf32>
    %129 = arith.mulf %128, %127 : vector<2x14x14xf32>
    %130 = math.tanh %129 : vector<2x14x14xf32>
    %cst_63 = arith.constant 5.000000e-01 : f32
    %131 = vector.broadcast %cst_63 : f32 to vector<2x14x14xf32>
    %132 = arith.mulf %131, %130 : vector<2x14x14xf32>
    %cst_64 = arith.constant 5.000000e-01 : f32
    %133 = vector.broadcast %cst_64 : f32 to vector<2x14x14xf32>
    %134 = arith.addf %132, %133 : vector<2x14x14xf32>
    %cst_65 = arith.constant 5.000000e-01 : f32
    %135 = vector.broadcast %cst_65 : f32 to vector<2x14x14xf32>
    %136 = arith.mulf %135, %134 : vector<2x14x14xf32>
    %137 = math.tanh %136 : vector<2x14x14xf32>
    %cst_66 = arith.constant 5.000000e-01 : f32
    %138 = vector.broadcast %cst_66 : f32 to vector<2x14x14xf32>
    %139 = arith.mulf %138, %137 : vector<2x14x14xf32>
    %cst_67 = arith.constant 5.000000e-01 : f32
    %140 = vector.broadcast %cst_67 : f32 to vector<2x14x14xf32>
    %141 = arith.addf %139, %140 : vector<2x14x14xf32>
    %cst_68 = arith.constant 5.000000e-01 : f32
    %142 = vector.broadcast %cst_68 : f32 to vector<2x14x14xf32>
    %143 = arith.mulf %142, %141 : vector<2x14x14xf32>
    %144 = math.tanh %143 : vector<2x14x14xf32>
    %cst_69 = arith.constant 5.000000e-01 : f32
    %145 = vector.broadcast %cst_69 : f32 to vector<2x14x14xf32>
    %146 = arith.mulf %145, %144 : vector<2x14x14xf32>
    %cst_70 = arith.constant 5.000000e-01 : f32
    %147 = vector.broadcast %cst_70 : f32 to vector<2x14x14xf32>
    %148 = arith.addf %146, %147 : vector<2x14x14xf32>
    %c0_71 = arith.constant 0 : index
    %c3_72 = arith.constant 3 : index
    %c0_73 = arith.constant 0 : index
    %c0_74 = arith.constant 0 : index
    %149 = vector.load %arg4[%c0_71, %c3_72, %c0_73, %c0_74] : memref<2x4x14x14xf32, #tpu.memory_space<vmem>>, vector<2x1x14x14xf32>
    %150 = vector.shape_cast %149 : vector<2x1x14x14xf32> to vector<2x14x14xf32>
    %151 = vector.shape_cast %148 : vector<2x14x14xf32> to vector<2x1x14x14xf32>
    tpu.vector_store %arg4[%c0_71, %c3_72, %c0_73, %c0_74], %151 {strides = array<i32>} : memref<2x4x14x14xf32, #tpu.memory_space<vmem>>, vector<2x1x14x14xf32>,
    return
  }
  func.func @transform_0(%arg0: i32) -> i32 {
    %c0_i32 = arith.constant 0 : i32
    %c0_i32_0 = arith.constant 0 : i32
    return %c0_i32 : i32
  }
  func.func @transform_1(%arg0: i32) -> i32 {
    %c0_i32 = arith.constant 0 : i32
    %c0_i32_0 = arith.constant 0 : i32
    return %c0_i32 : i32
  }
  func.func @transform_2(%arg0: i32) -> (i32, i32, i32, i32) {
    %c0_i32 = arith.constant 0 : i32
    %c0_i32_0 = arith.constant 0 : i32
    %c0_i32_1 = arith.constant 0 : i32
    %c0_i32_2 = arith.constant 0 : i32
    %c0_i32_3 = arith.constant 0 : i32
    return %c0_i32, %c0_i32_0, %c0_i32_1, %c0_i32_2 : i32, i32, i32, i32
  }
  func.func @transform_3(%arg0: i32) -> (i32, i32, i32, i32) {
    %c0_i32 = arith.constant 0 : i32
    %c0_i32_0 = arith.constant 0 : i32
    %c0_i32_1 = arith.constant 0 : i32
    %c0_i32_2 = arith.constant 0 : i32
    %c0_i32_3 = arith.constant 0 : i32
    return %c0_i32, %c0_i32_0, %c0_i32_1, %c0_i32_2 : i32, i32, i32, i32
  }
}

</mosaic_0001>

<bundles_post_ra>
// kernel: tpu_custom_call.1
= control target key start
LH: loop header
LB: loop body
LE: loop exit
PB: predicated region body
PF: predicated region fallthrough
CT: control target
= control target key end

     0   :  { %8 = vsyncpa [#allocation4], 0  ;;  %s820_s0 = inlined_call_operand.hbm [shape: f32[8], index: 0, kind: input, shape index: {}]   ;;  %s821_s1 = inlined_call_operand.vmem [shape: f32[4], index: 1, kind: input, shape index: {}]   ;;  %s822_s2 = inlined_call_operand.hbm [shape: f32[2,4,16,16], index: 2, kind: input, shape index: {}]   ;;  %s823_s3 = inlined_call_operand.vmem [shape: f32[2,4,14,14], index: 3, kind: output, shape index: {}]  }
   0x1   :  { %9 = vsyncpa [#allocation5], 0  ;;  %s25_s14 = sshll.u32 %s821_s1, 4  ;;  %s26_s14 = int_to_ptr.vmem [resolvable:$true] %s25_s14 }
   0x2   :  { %10 = vsyncpa [#allocation3], 0  ;;  %s582_s17 = scalar_lea.hbm %s820_s0, 16 }
   0x3   :  { %p583_p0 = scmp.ne.s32.totalorder %s820_s0, %s582_s17  ;;  %p586_p1 = scmp.lt.u32.totalorder %s582_s17, %s820_s0 }
   0x5   :  { %p588_p2 = pnand %p586_p1, %p583_p0 }
   0x7   :  { %591 = shalt.err (!%p588_p2)
}
   0x8   :  { %s632_s22 = smov [#allocation2]   ;;  %s592_s1 = scalar_lea.vmem %s26_s14, 16 }
   0x9   :  { %18 = dma.hbm_to_smem %s820_s0, 16, %s632_s22, [#allocation4]  }
   0xa   :  { %p593_p3 = scmp.ne.s32.totalorder %s26_s14, %s592_s1  ;;  %p597_p4 = scmp.lt.s32.totalorder %s26_s14, %s26_s14 }
   0xb   :  { %p598_p5 = scmp.lt.s32.totalorder %s592_s1, %s592_s1 }
   0xd   :  { %p599_p6 = por %p598_p5, %p597_p4 }
   0xf   :  { %p600_p7 = pnand %p599_p6, %p593_p3 }
  0x11   :  { %603 = shalt.err (!%p600_p7)
}
  0x12   :  { %s633_s25 = smov [#allocation6]   ;;  %s634_s26 = smov [#allocation7]  }
  0x13   :  { %28 = dma.vmem_to_smem %s26_s14, 16, %s633_s25, [#allocation5]  }
  0x14   :  { %s34_s27 = sshll.u32 %s634_s26, 4  ;;  %s604_s30 = scalar_lea.hbm %s822_s2, 2048  ;;  %s35_s27 = int_to_ptr.vmem [resolvable:$true] %s34_s27 }
  0x15   :  { %p605_p8 = scmp.ne.s32.totalorder %s822_s2, %s604_s30  ;;  %p608_p9 = scmp.lt.u32.totalorder %s604_s30, %s822_s2 }
  0x17   :  { %p610_p10 = pnand %p608_p9, %p605_p8 }
  0x19   :  { %613 = shalt.err (!%p610_p10)
}
  0x1a   :  { %s614_s7 = scalar_lea.vmem %s35_s27, 2048  ;;  %p619_p12 = scmp.lt.s32.totalorder %s35_s27, %s35_s27 }
  0x1b   :  { %p615_p11 = scmp.ne.s32.totalorder %s35_s27, %s614_s7  ;;  %p620_p13 = scmp.lt.s32.totalorder %s614_s7, %s614_s7 }
  0x1d   :  { %p621_p0 = por %p620_p13, %p619_p12 }
  0x1f   :  { %p622_p1 = pnand %p621_p0, %p615_p11 }
  0x21   :  { %625 = shalt.err (!%p622_p1)
}
  0x22   :  { %s635_s8 = smov 128   ;;  %s636_s9 = smov 8  }
  0x23   :  { %40 = dma.hbm_to_vmem [thread:$0]  %s822_s2, 2048, %s35_s27, [#allocation3], %s635_s8, %s635_s8, %s636_s9  }
  0x24   :  { %626 = dma.done.wait [#allocation4], 16  }
  0x25   :  { %627 = vsyncadd [#allocation4], 4294967280 }
  0x26   :  { %628 = dma.done.wait [#allocation5], 16  }
  0x27   :  { %629 = vsyncadd [#allocation5], 4294967280 }
  0x28   :  { %630 = dma.done.wait [#allocation3], 2048  }
  0x29   :  { %631 = vsyncadd [#allocation3], 4294965248 }
  0x2a   :  { %50 = sfence }
  0x2b   :  { %s70_s12 = sld [smem:[#allocation2]]  ;;  %s458_s13 = sld [smem:[#allocation2 + $0x2]]  ;;  %v53_v0 = vld [vmem:[#allocation7 + $0x41] sm:$0xff]  ;;  %v58_v1 = vld [vmem:[#allocation7 + $0x51] sm:$0xff]  ;;  %v54_v4 = vld [vmem:[#allocation7 + $0x49] sm:$0x3f] }
  0x2c   :  { %s90_s14 = sld [smem:[#allocation6]]  ;;  %s459_s15 = sld [smem:[#allocation2 + $0x1]]  ;;  %v51_v2 = vld [vmem:[#allocation7 + $0x1] sm:$0xff]  ;;  %v56_v3 = vld [vmem:[#allocation7 + $0x11] sm:$0xff]  ;;  %v59_v11 = vld [vmem:[#allocation7 + $0x59] sm:$0x3f] }
  0x2d   :  { %s460_s16 = sld [smem:[#allocation2 + $0x3]]  ;;  %s685_s17 = sld [smem:[#allocation6 + $0x1]]  ;;  %v52_v12 = vld [vmem:[#allocation7 + $0x9] sm:$0x3f]  ;;  %v57_v17 = vld [vmem:[#allocation7 + $0x19] sm:$0x3f] }
  0x2e   :  { %s687_s2 = sld [smem:[#allocation2 + $0x4]]  ;;  %s689_s18 = sld [smem:[#allocation2 + $0x6]]  ;;  %v62_v45 = vld [vmem:[#allocation7 + $0x29] sm:$0x3f]  ;;  %v67_v49 = vld [vmem:[#allocation7 + $0x39] sm:$0x3f] }
  0x2f   :  { %s691_s19 = sld [smem:[#allocation6 + $0x2]]  ;;  %s694_s20 = sld [smem:[#allocation2 + $0x5]]  ;;  %v61_v54 = vld [vmem:[#allocation7 + $0x21] sm:$0xff]  ;;  %v66_v55 = vld [vmem:[#allocation7 + $0x31] sm:$0xff]  ;;  %v702_v59 = vld [vmem:[#allocation7 + $0x69] sm:$0x3f] }
  0x30   :  { %s696_s21 = sld [smem:[#allocation2 + $0x7]]  ;;  %s699_s22 = sld [smem:[#allocation6 + $0x3]]  ;;  %v704_v60 = vld [vmem:[#allocation7 + $0x79] sm:$0x3f]  ;;  %vm160_vm0 = vcmask 113664   ;;  %vm162_vm1 = vcmask 111616  }
  0x31   :  { %v71_v5 = vstv %s70_s12  ;;  %v81_v6 = vstv %s458_s13  ;;  %s637_s23 = smov 127  }
  0x32   :  { %v74_v7 = vmul.f32 %v71_v5, %v53_v0  ;;  %v84_v8 = vmul.f32 %v81_v6, %v58_v1  ;;  %v91_v9 = vstv %s90_s14  ;;  %v72_v10 = vmul.f32 %v71_v5, %v51_v2 }
  0x33   :  { %v167_v13 = vstv %s459_s15  ;;  %v177_v14 = vstv %s460_s16  ;;  %v82_v15 = vmul.f32 %v81_v6, %v56_v3  ;;  %v75_v16 = vmul.f32 %v71_v5, %v54_v4 }
  0x34   :  { %v88_v18 = vadd.f32 %v84_v8, %v74_v7  ;;  %v170_v19 = vmul.f32 %v167_v13, %v53_v0  ;;  %v180_v20 = vmul.f32 %v177_v14, %v58_v1  ;;  %v168_v21 = vmul.f32 %v167_v13, %v51_v2  ;;  %v707_v0 = vld [vmem:[#allocation7 + $0x61] sm:$0xff]  ;;  %v709_v1 = vld [vmem:[#allocation7 + $0x71] sm:$0xff] }
  0x35   :  { %v86_v22 = vadd.f32 %v82_v15, %v72_v10  ;;  %v178_v23 = vmul.f32 %v177_v14, %v56_v3  ;;  %v85_v24 = vmul.f32 %v81_v6, %v59_v11  ;;  %v73_v25 = vmul.f32 %v71_v5, %v52_v12 }
  0x36   :  { %v94_v26 = vadd.f32 %v91_v9, %v88_v18  ;;  %v83_v27 = vmul.f32 %v81_v6, %v57_v17  ;;  %v169_v28 = vmul.f32 %v167_v13, %v52_v12  ;;  %v179_v29 = vmul.f32 %v177_v14, %v57_v17 }
  0x37   :  { %v92_v30 = vadd.f32 %v91_v9, %v86_v22  ;;  %v89_v31 = vadd.f32 %v85_v24, %v75_v16  ;;  %v187_v32 = vstv %s685_s17  ;;  %v182_v33 = vadd.f32 %v178_v23, %v168_v21 }
  0x38   :  { %v98_v34 = vmul.f32 0.5, %v94_v26  ;;  %v87_v35 = vadd.f32 %v83_v27, %v73_v25  ;;  %v183_v36 = vadd.f32 %v179_v29, %v169_v28  ;;  %v171_v37 = vmul.f32 %v167_v13, %v54_v4 }
  0x39   :  { %v96_v38 = vmul.f32 0.5, %v92_v30  ;;  %v95_v39 = vadd.f32 %v91_v9, %v89_v31  ;;  %v188_v40 = vadd.f32 %v187_v32, %v182_v33  ;;  %v181_v41 = vmul.f32 %v177_v14, %v59_v11 }
  0x3a   :  { %486 = vtanh.f32 %v98_v34  ;;  %v93_v42 = vadd.f32 %v91_v9, %v87_v35  ;;  %v189_v43 = vadd.f32 %v187_v32, %v183_v36  ;;  %v184_v44 = vadd.f32 %v180_v20, %v170_v19 }
  0x3b   :  { %488 = vtanh.f32 %v96_v38  ;;  %v99_v46 = vmul.f32 0.5, %v95_v39  ;;  %v192_v47 = vmul.f32 0.5, %v188_v40  ;;  %v185_v48 = vadd.f32 %v181_v41, %v171_v37 }
  0x3c   :  { %v97_v50 = vmul.f32 0.5, %v93_v42  ;;  %v193_v51 = vmul.f32 0.5, %v189_v43  ;;  %v190_v52 = vadd.f32 %v187_v32, %v184_v44  ;;  %v262_v53 = vstv %s687_s2 }
  0x3d   :  { %490 = vtanh.f32 %v99_v46  ;;  %v191_v56 = vadd.f32 %v187_v32, %v185_v48  ;;  %v264_v57 = vmul.f32 %v262_v53, %v62_v45  ;;  %v272_v58 = vstv %s689_s18 }
  0x3e   :  { %492 = vtanh.f32 %v97_v50  ;;  %v194_v61 = vmul.f32 0.5, %v190_v52  ;;  %v274_v62 = vmul.f32 %v272_v58, %v67_v49  ;;  %v282_v63 = vstv %s691_s19 }
  0x3f   :  { %494 = vtanh.f32 %v193_v51  ;;  %v195_v2 = vmul.f32 0.5, %v191_v56  ;;  %v263_v3 = vmul.f32 %v262_v53, %v61_v54  ;;  %v273_v4 = vmul.f32 %v272_v58, %v66_v55 }
  0x40   :  { %496 = vtanh.f32 %v192_v47  ;;  %v278_v5 = vadd.f32 %v274_v62, %v264_v57  ;;  %v266_v6 = vmul.f32 %v262_v53, %v702_v59  ;;  %v276_v7 = vmul.f32 %v272_v58, %v704_v60 }
  0x41   :  { %498 = vtanh.f32 %v195_v2  ;;  %v277_v8 = vadd.f32 %v273_v4, %v263_v3  ;;  %v265_v9 = vmul.f32 %v262_v53, %v707_v0  ;;  %v275_v10 = vmul.f32 %v272_v58, %v709_v1 }
  0x42   :  { %500 = vtanh.f32 %v194_v61  ;;  %v284_v11 = vadd.f32 %v282_v63, %v278_v5  ;;  %v280_v12 = vadd.f32 %v276_v7, %v266_v6  ;;  %v716_v13 = vstv %s694_s20 }
  0x43   :  { %v283_v14 = vadd.f32 %v282_v63, %v277_v8  ;;  %v279_v15 = vadd.f32 %v275_v10, %v265_v9  ;;  %v359_v16 = vmul.f32 %v716_v13, %v62_v45  ;;  %v720_v17 = vstv %s696_s21 }
  0x44   :  { %v487_v18 = vpop.eup %486  ;;  %v288_v19 = vmul.f32 0.5, %v284_v11  ;;  %v286_v20 = vadd.f32 %v282_v63, %v280_v12  ;;  %v369_v21 = vmul.f32 %v720_v17, %v67_v49  ;;  %v724_v22 = vstv %s699_s22 }
  0x45   :  { %v489_v23 = vpop.eup %488  ;;  %v106_v24 = vmul.f32 0.5, %v487_v18  ;;  %v287_v25 = vmul.f32 0.5, %v283_v14  ;;  %v285_v26 = vadd.f32 %v282_v63, %v279_v15  ;;  %v358_v27 = vmul.f32 %v716_v13, %v61_v54 }
  0x46   :  { %v104_v28 = vmul.f32 0.5, %v489_v23  ;;  %502 = vtanh.f32 %v288_v19  ;;  %v290_v29 = vmul.f32 0.5, %v286_v20  ;;  %v373_v30 = vadd.f32 %v369_v21, %v359_v16 }
  0x47   :  { %v491_v31 = vpop.eup %490  ;;  %v110_v32 = vadd.f32 0.5, %v106_v24  ;;  %504 = vtanh.f32 %v287_v25  ;;  %v289_v33 = vmul.f32 0.5, %v285_v26  ;;  %v368_v34 = vmul.f32 %v720_v17, %v66_v55 }
  0x48   :  { %v493_v35 = vpop.eup %492  ;;  %v108_v36 = vadd.f32 0.5, %v104_v28  ;;  %v107_v37 = vmul.f32 0.5, %v491_v31  ;;  %506 = vtanh.f32 %v290_v29  ;;  %v379_v38 = vadd.f32 %v724_v22, %v373_v30 }
  0x49   :  { %v495_v39 = vpop.eup %494  ;;  %v114_v40 = vmul.f32 0.5, %v110_v32  ;;  %v105_v41 = vmul.f32 0.5, %v493_v35  ;;  %508 = vtanh.f32 %v289_v33  ;;  %v372_v42 = vadd.f32 %v368_v34, %v358_v27 }
  0x4a   :  { %v497_v43 = vpop.eup %496  ;;  %v112_v44 = vmul.f32 0.5, %v108_v36  ;;  %v111_v45 = vadd.f32 0.5, %v107_v37  ;;  %v201_v46 = vmul.f32 0.5, %v495_v39  ;;  %v383_v47 = vmul.f32 0.5, %v379_v38 }
  0x4b   :  { %v499_v48 = vpop.eup %498  ;;  %510 = vtanh.f32 %v114_v40  ;;  %v109_v49 = vadd.f32 0.5, %v105_v41  ;;  %v200_v50 = vmul.f32 0.5, %v497_v43  ;;  %v378_v51 = vadd.f32 %v724_v22, %v372_v42 }
  0x4c   :  { %v501_v52 = vpop.eup %500  ;;  %512 = vtanh.f32 %v112_v44  ;;  %v115_v53 = vmul.f32 0.5, %v111_v45  ;;  %v205_v54 = vadd.f32 0.5, %v201_v46  ;;  %v203_v55 = vmul.f32 0.5, %v499_v48 }
  0x4d   :  { %v113_v56 = vmul.f32 0.5, %v109_v49  ;;  %v204_v57 = vadd.f32 0.5, %v200_v50  ;;  %v202_v58 = vmul.f32 0.5, %v501_v52  ;;  %514 = vtanh.f32 %v383_v47 }
  0x4e   :  { %516 = vtanh.f32 %v115_v53  ;;  %v209_v61 = vmul.f32 0.5, %v205_v54  ;;  %v207_v62 = vadd.f32 0.5, %v203_v55  ;;  %v382_v63 = vmul.f32 0.5, %v378_v51 }
  0x4f   :  { %518 = vtanh.f32 %v113_v56  ;;  %v208_v2 = vmul.f32 0.5, %v204_v57  ;;  %v206_v3 = vadd.f32 0.5, %v202_v58  ;;  %v361_v4 = vmul.f32 %v716_v13, %v702_v59 }
  0x50   :  { %v503_v5 = vpop.eup %502  ;;  %520 = vtanh.f32 %v209_v61  ;;  %v211_v6 = vmul.f32 0.5, %v207_v62  ;;  %v371_v7 = vmul.f32 %v720_v17, %v704_v60  ;;  %v360_v8 = vmul.f32 %v716_v13, %v707_v0 }
  0x51   :  { %v505_v9 = vpop.eup %504  ;;  %522 = vtanh.f32 %v208_v2  ;;  %v210_v10 = vmul.f32 0.5, %v206_v3  ;;  %v296_v11 = vmul.f32 0.5, %v503_v5  ;;  %v370_v12 = vmul.f32 %v720_v17, %v709_v1 }
  0x52   :  { %v507_v14 = vpop.eup %506  ;;  %524 = vtanh.f32 %v211_v6  ;;  %v295_v15 = vmul.f32 0.5, %v505_v9  ;;  %v375_v59 = vadd.f32 %v371_v7, %v361_v4 }
  0x53   :  { %v509_v16 = vpop.eup %508  ;;  %526 = vtanh.f32 %v210_v10  ;;  %v300_v18 = vadd.f32 0.5, %v296_v11  ;;  %v298_v19 = vmul.f32 0.5, %v507_v14  ;;  %v374_v24 = vadd.f32 %v370_v12, %v360_v8 }
  0x54   :  { %v299_v20 = vadd.f32 0.5, %v295_v15  ;;  %v297_v60 = vmul.f32 0.5, %v509_v16  ;;  %528 = vtanh.f32 %v382_v63  ;;  %v381_v0 = vadd.f32 %v724_v22, %v375_v59 }
  0x55   :  { %v511_v13 = vpop.eup %510  ;;  %v304_v21 = vmul.f32 0.5, %v300_v18  ;;  %v302_v23 = vadd.f32 0.5, %v298_v19  ;;  %v380_v38 = vadd.f32 %v724_v22, %v374_v24 }
  0x56   :  { %v513_v25 = vpop.eup %512  ;;  %v122_v26 = vmul.f32 0.5, %v511_v13  ;;  %v303_v1 = vmul.f32 0.5, %v299_v20  ;;  %v301_v17 = vadd.f32 0.5, %v297_v60  ;;  %v385_v30 = vmul.f32 0.5, %v381_v0 }
  0x57   :  { %v515_v27 = vpop.eup %514  ;;  %v120_v28 = vmul.f32 0.5, %v513_v25  ;;  %530 = vtanh.f32 %v304_v21  ;;  %v306_v29 = vmul.f32 0.5, %v302_v23  ;;  %v384_v9 = vmul.f32 0.5, %v380_v38 }
  0x58   :  { %v517_v31 = vpop.eup %516  ;;  %v126_v32 = vadd.f32 0.5, %v122_v26  ;;  %532 = vtanh.f32 %v303_v1  ;;  %v305_v33 = vmul.f32 0.5, %v301_v17  ;;  %v391_v34 = vmul.f32 0.5, %v515_v27 }
  0x59   :  { %v519_v35 = vpop.eup %518  ;;  %v124_v36 = vadd.f32 0.5, %v120_v28  ;;  %v123_v37 = vmul.f32 0.5, %v517_v31  ;;  %534 = vtanh.f32 %v306_v29 }
  0x5a   :  { %v521_v39 = vpop.eup %520  ;;  %v130_v40 = vmul.f32 0.5, %v126_v32  ;;  %v121_v41 = vmul.f32 0.5, %v519_v35  ;;  %536 = vtanh.f32 %v305_v33  ;;  %v395_v42 = vadd.f32 0.5, %v391_v34 }
  0x5b   :  { %v523_v43 = vpop.eup %522  ;;  %v128_v44 = vmul.f32 0.5, %v124_v36  ;;  %v127_v45 = vadd.f32 0.5, %v123_v37  ;;  %v217_v46 = vmul.f32 0.5, %v521_v39  ;;  %538 = vtanh.f32 %v385_v30 }
  0x5c   :  { %v525_v47 = vpop.eup %524  ;;  %540 = vtanh.f32 %v130_v40  ;;  %v125_v48 = vadd.f32 0.5, %v121_v41  ;;  %v216_v49 = vmul.f32 0.5, %v523_v43  ;;  %v399_v50 = vmul.f32 0.5, %v395_v42 }
  0x5d   :  { %v527_v51 = vpop.eup %526  ;;  %542 = vtanh.f32 %v128_v44  ;;  %v131_v52 = vmul.f32 0.5, %v127_v45  ;;  %v221_v53 = vadd.f32 0.5, %v217_v46  ;;  %v219_v22 = vmul.f32 0.5, %v525_v47 }
  0x5e   :  { %v529_v54 = vpop.eup %528  ;;  %v129_v55 = vmul.f32 0.5, %v125_v48  ;;  %v220_v56 = vadd.f32 0.5, %v216_v49  ;;  %v218_v57 = vmul.f32 0.5, %v527_v51  ;;  %544 = vtanh.f32 %v399_v50 }
  0x5f   :  { %546 = vtanh.f32 %v131_v52  ;;  %v225_v58 = vmul.f32 0.5, %v221_v53  ;;  %v223_v61 = vadd.f32 0.5, %v219_v22  ;;  %v390_v62 = vmul.f32 0.5, %v529_v54 }
  0x60   :  { %548 = vtanh.f32 %v129_v55  ;;  %v224_v63 = vmul.f32 0.5, %v220_v56  ;;  %v222_v2 = vadd.f32 0.5, %v218_v57 }
  0x61   :  { %v531_v3 = vpop.eup %530  ;;  %550 = vtanh.f32 %v225_v58  ;;  %v227_v4 = vmul.f32 0.5, %v223_v61  ;;  %v394_v5 = vadd.f32 0.5, %v390_v62 }
  0x62   :  { %v533_v6 = vpop.eup %532  ;;  %552 = vtanh.f32 %v224_v63  ;;  %v226_v7 = vmul.f32 0.5, %v222_v2  ;;  %v312_v8 = vmul.f32 0.5, %v531_v3 }
  0x63   :  { %v535_v10 = vpop.eup %534  ;;  %554 = vtanh.f32 %v227_v4  ;;  %v311_v11 = vmul.f32 0.5, %v533_v6  ;;  %v398_v12 = vmul.f32 0.5, %v394_v5 }
  0x64   :  { %v537_v14 = vpop.eup %536  ;;  %556 = vtanh.f32 %v226_v7  ;;  %v316_v15 = vadd.f32 0.5, %v312_v8  ;;  %v314_v59 = vmul.f32 0.5, %v535_v10 }
  0x65   :  { %v539_v16 = vpop.eup %538  ;;  %v315_v18 = vadd.f32 0.5, %v311_v11  ;;  %v313_v19 = vmul.f32 0.5, %v537_v14  ;;  %558 = vtanh.f32 %v398_v12 }
  0x66   :  { %v541_v20 = vpop.eup %540  ;;  %v320_v60 = vmul.f32 0.5, %v316_v15  ;;  %v318_v0 = vadd.f32 0.5, %v314_v59  ;;  %v393_v13 = vmul.f32 0.5, %v539_v16  ;;  %560 = vtanh.f32 %v384_v9 }
  0x67   :  { %v543_v21 = vpop.eup %542  ;;  %v138_v23 = vmul.f32 0.5, %v541_v20  ;;  %v319_v24 = vmul.f32 0.5, %v315_v18  ;;  %v317_v25 = vadd.f32 0.5, %v313_v19 }
  0x68   :  { %v545_v26 = vpop.eup %544  ;;  %v136_v1 = vmul.f32 0.5, %v543_v21  ;;  %562 = vtanh.f32 %v320_v60  ;;  %v322_v17 = vmul.f32 0.5, %v318_v0  ;;  %v397_v27 = vadd.f32 0.5, %v393_v13 }
  0x69   :  { %v547_v28 = vpop.eup %546  ;;  %v142_v29 = vadd.f32 0.5, %v138_v23  ;;  %564 = vtanh.f32 %v319_v24  ;;  %v321_v30 = vmul.f32 0.5, %v317_v25  ;;  %v407_v31 = vmul.f32 0.5, %v545_v26 }
  0x6a   :  { %v549_v32 = vpop.eup %548  ;;  %v140_v33 = vadd.f32 0.5, %v136_v1  ;;  %v139_v34 = vmul.f32 0.5, %v547_v28  ;;  %566 = vtanh.f32 %v322_v17  ;;  %v401_v35 = vmul.f32 0.5, %v397_v27 }
  0x6b   :  { %v551_v36 = vpop.eup %550  ;;  %152 = vrot.lane.b32.xlu1 %v142_v29, %s637_s23  ;;  %v137_v37 = vmul.f32 0.5, %v549_v32  ;;  %568 = vtanh.f32 %v321_v30  ;;  %v411_v38 = vadd.f32 0.5, %v407_v31 }
  0x6c   :  { %v553_v39 = vpop.eup %552  ;;  %148 = vrot.lane.b32.xlu0 %v140_v33, %s637_s23  ;;  %v143_v40 = vadd.f32 0.5, %v139_v34  ;;  %v233_v41 = vmul.f32 0.5, %v551_v36  ;;  %570 = vtanh.f32 %v401_v35 }
  0x6d   :  { %v555_v42 = vpop.eup %554  ;;  %v141_v43 = vadd.f32 0.5, %v137_v37  ;;  %v232_v44 = vmul.f32 0.5, %v553_v39  ;;  %v415_v45 = vmul.f32 0.5, %v411_v38 }
  0x6e   :  { %v557_v46 = vpop.eup %556  ;;  %v237_v48 = vadd.f32 0.5, %v233_v41  ;;  %v235_v49 = vmul.f32 0.5, %v555_v42 }
  0x6f   :  { %v559_v47 = vpop.eup %558  ;;  %154 = vrot.lane.b32.xlu1 %v143_v40, %s637_s23  ;;  %572 = vtanh.f32 %v415_v45  ;;  %v236_v51 = vadd.f32 0.5, %v232_v44  ;;  %v234_v52 = vmul.f32 0.5, %v557_v46 }
  0x70   :  { %v561_v50 = vpop.eup %560  ;;  %150 = vrot.lane.b32.xlu0 %v141_v43, %s637_s23  ;;  %v406_v53 = vmul.f32 0.5, %v559_v47  ;;  %v239_v57 = vadd.f32 0.5, %v235_v49 }
  0x71   :  { %v392_v22 = vmul.f32 0.5, %v561_v50  ;;  %v238_v63 = vadd.f32 0.5, %v234_v52 }
  0x72   :  { %v563_v54 = vpop.eup %562  ;;  %v410_v55 = vadd.f32 0.5, %v406_v53 }
  0x73   :  { %v565_v56 = vpop.eup %564  ;;  %246 = vrot.lane.b32.xlu1 %v237_v48, %s637_s23  ;;  %v328_v58 = vmul.f32 0.5, %v563_v54  ;;  %v396_v61 = vadd.f32 0.5, %v392_v22 }
  0x74   :  { %v567_v62 = vpop.eup %566  ;;  %244 = vrot.lane.b32.xlu0 %v236_v51, %s637_s23  ;;  %v327_v2 = vmul.f32 0.5, %v565_v56  ;;  %v414_v3 = vmul.f32 0.5, %v410_v55 }
  0x75   :  { %v569_v4 = vpop.eup %568  ;;  %v400_v5 = vmul.f32 0.5, %v396_v61  ;;  %v332_v7 = vadd.f32 0.5, %v328_v58  ;;  %v330_v8 = vmul.f32 0.5, %v567_v62 }
  0x76   :  { %v571_v6 = vpop.eup %570  ;;  %574 = vtanh.f32 %v414_v3  ;;  %v331_v10 = vadd.f32 0.5, %v327_v2  ;;  %v329_v11 = vmul.f32 0.5, %v569_v4 }
  0x77   :  { %250 = vrot.lane.b32.xlu1 %v239_v57, %s637_s23  ;;  %v409_v9 = vmul.f32 0.5, %v571_v6  ;;  %576 = vtanh.f32 %v400_v5  ;;  %v334_v15 = vadd.f32 0.5, %v330_v8 }
  0x78   :  { %248 = vrot.lane.b32.xlu0 %v238_v63, %s637_s23  ;;  %v333_v18 = vadd.f32 0.5, %v329_v11 }
  0x79   :  { %v573_v12 = vpop.eup %572  ;;  %v413_v14 = vadd.f32 0.5, %v409_v9 }
  0x7a   :  { %v423_v59 = vmul.f32 0.5, %v573_v12 }
  0x7b   :  { %341 = vrot.lane.b32.xlu1 %v332_v7, %s637_s23  ;;  %v417_v16 = vmul.f32 0.5, %v413_v14 }
  0x7c   :  { %339 = vrot.lane.b32.xlu0 %v331_v10, %s637_s23  ;;  %v427_v19 = vadd.f32 0.5, %v423_v59 }
  0x7d   :  { %578 = vtanh.f32 %v417_v16 }
  0x7f   :  { %345 = vrot.lane.b32.xlu1 %v334_v15, %s637_s23 }
  0x80   :  { %v575_v20 = vpop.eup %574  ;;  %343 = vrot.lane.b32.xlu0 %v333_v18, %s637_s23 }
  0x81   :  { %v577_v60 = vpop.eup %576  ;;  %v422_v0 = vmul.f32 0.5, %v575_v20 }
  0x82   :  { %v408_v13 = vmul.f32 0.5, %v577_v60 }
  0x83   :  { %436 = vrot.lane.b32.xlu1 %v427_v19, %s637_s23  ;;  %v426_v21 = vadd.f32 0.5, %v422_v0 }
  0x84   :  { %v412_v23 = vadd.f32 0.5, %v408_v13 }
  0x85   :  { %434 = vrot.lane.b32.xlu0 %v426_v21, %s637_s23 }
  0x86   :  { %v416_v24 = vmul.f32 0.5, %v412_v23 }
  0x87   :  { %v579_v25 = vpop.eup %578 }
  0x88   :  { %v425_v26 = vmul.f32 0.5, %v579_v25  ;;  %580 = vtanh.f32 %v416_v24 }
  0x8a   :  { %v429_v1 = vadd.f32 0.5, %v425_v26 }
  0x8c   :  { %440 = vrot.lane.b32.xlu1 %v429_v1, %s637_s23 }
  0x92   :  { %v581_v17 = vpop.eup %580 }
  0x93   :  { %v424_v27 = vmul.f32 0.5, %v581_v17 }
  0x95   :  { %v428_v28 = vadd.f32 0.5, %v424_v27 }
  0x97   :  { %438 = vrot.lane.b32.xlu0 %v428_v28, %s637_s23 }
  0xdd   :  { %v153_v29 = vpop.permute.xlu1 %152 }
  0xde   :  { %164 = vst.msk [vmem:[%s823_s3 + $0x40] sm:$0xff] %vm160_vm0, %v153_v29  ;;  %v149_v30 = vpop.permute.xlu0 %148 }
  0xdf   :  { %161 = vst.msk [vmem:[%s823_s3] sm:$0xff] %vm160_vm0, %v149_v30 }
  0xe1   :  { %v155_v31 = vpop.permute.xlu1 %154 }
  0xe2   :  { %165 = vst.msk [vmem:[%s823_s3 + $0x48] sm:$0x3f] %vm162_vm1, %v155_v31  ;;  %v151_v32 = vpop.permute.xlu0 %150 }
  0xe3   :  { %163 = vst.msk [vmem:[%s823_s3 + $0x8] sm:$0x3f] %vm162_vm1, %v151_v32 }
  0xe5   :  { %v247_v33 = vpop.permute.xlu1 %246 }
  0xe6   :  { %463 = vst.msk [vmem:[%s823_s3 + $0x18] sm:$0x3f] %vm162_vm1, %v247_v33  ;;  %v245_v34 = vpop.permute.xlu0 %244 }
  0xe7   :  { %462 = vst.msk [vmem:[%s823_s3 + $0x10] sm:$0xff] %vm160_vm0, %v245_v34 }
  0xe9   :  { %v251_v35 = vpop.permute.xlu1 %250 }
  0xea   :  { %465 = vst.msk [vmem:[%s823_s3 + $0x58] sm:$0x3f] %vm162_vm1, %v251_v35  ;;  %v249_v36 = vpop.permute.xlu0 %248 }
  0xeb   :  { %464 = vst.msk [vmem:[%s823_s3 + $0x50] sm:$0xff] %vm160_vm0, %v249_v36 }
  0xed   :  { %v342_v37 = vpop.permute.xlu1 %341 }
  0xee   :  { %470 = vst.msk [vmem:[%s823_s3 + $0x28] sm:$0x3f] %vm162_vm1, %v342_v37  ;;  %v340_v38 = vpop.permute.xlu0 %339 }
  0xef   :  { %469 = vst.msk [vmem:[%s823_s3 + $0x20] sm:$0xff] %vm160_vm0, %v340_v38 }
  0xf1   :  { %v346_v39 = vpop.permute.xlu1 %345 }
  0xf2   :  { %472 = vst.msk [vmem:[%s823_s3 + $0x68] sm:$0x3f] %vm162_vm1, %v346_v39  ;;  %v344_v40 = vpop.permute.xlu0 %343 }
  0xf3   :  { %471 = vst.msk [vmem:[%s823_s3 + $0x60] sm:$0xff] %vm160_vm0, %v344_v40 }
  0xf5   :  { %v437_v41 = vpop.permute.xlu1 %436 }
  0xf6   :  { %477 = vst.msk [vmem:[%s823_s3 + $0x38] sm:$0x3f] %vm162_vm1, %v437_v41 }
  0xf7   :  { %v435_v42 = vpop.permute.xlu0 %434 }
  0xf8   :  { %476 = vst.msk [vmem:[%s823_s3 + $0x30] sm:$0xff] %vm160_vm0, %v435_v42 }
  0xfe   :  { %v441_v43 = vpop.permute.xlu1 %440 }
  0xff   :  { %479 = vst.msk [vmem:[%s823_s3 + $0x78] sm:$0x3f] %vm162_vm1, %v441_v43 }
 0x109   :  { %v439_v44 = vpop.permute.xlu0 %438 }
 0x10a   :  { %478 = vst.msk [vmem:[%s823_s3 + $0x70] sm:$0xff] %vm160_vm0, %v439_v44 }
 0x10b   :  { %455 = vsyncpa [#allocation3], 1 }
 0x10c   :  { %456 = vsyncpa [#allocation4], 1 }
 0x10d   :  { %457 = vsyncpa [#allocation5], 1 }

</bundles_post_ra>
